<compile_context>
chip_gen: v7x
topology: tpu7x:2x2x1
jax: 0.10.0
libtpu: 0.0.40
codegen_flags: <defaults>
</compile_context>

<pallas_src>
import functools

import jax
import jax.numpy as jnp
from jax import lax
from jax.experimental import pallas as pl
from jax.experimental.pallas import tpu as pltpu


def _smooth_l1(x):
    # torch F.smooth_l1_loss, beta = 1.0
    a = jnp.abs(x)
    return jnp.where(a < 1.0, 0.5 * a * a, a - 0.5)


def _traj_loss_kernel(pred_ref, lv_ref, sm_ref, out_ref, *, M, K, TD, BM):
    """One M-chunk.  pred_ref (BM, K*TD); lv_ref (2, BM, 2T) = [label, valid_xy];
    sm_ref (3, BM, K) = [log_prob, pdx, pdy]; out_ref (8, 128) partial tile."""
    i = pl.program_id(0)

    # ---- squared endpoint distance per mode, lane-parallel over K -------------
    pdx = sm_ref[1]                                   # (BM, K)
    pdy = sm_ref[2]                                   # (BM, K)
    d2 = pdx * pdx + pdy * pdy                        # (BM, K)

    # first-minimum argmin over modes (matches torch first-occurrence tie-break;
    # NaN distances fall through to "no mode", which row_ok/sel mask to zero).
    best_d2 = jnp.min(d2, axis=-1, keepdims=True)     # (BM, 1)
    kiota = lax.broadcasted_iota(jnp.int32, (BM, K), 1)
    best_id = jnp.min(jnp.where(d2 == best_d2, kiota, K), axis=-1, keepdims=True)

    # ---- gather best trajectory: K-way select chain, slicing the ref directly --
    best_id_b = jnp.broadcast_to(best_id, (BM, TD))   # single lane-broadcast, hoisted
    pred_best = pred_ref[:, 0:TD]
    for k in range(1, K):
        pred_best = jnp.where(best_id_b == k, pred_ref[:, k * TD:(k + 1) * TD], pred_best)

    # ---- row-validity mask for the (possibly partial) last chunk ---------------
    rows = i * BM + lax.broadcasted_iota(jnp.int32, (BM, 1), 0)
    row_ok = rows < M                                 # (BM, 1) bool

    # ---- masked smooth-L1 regression partial sum -------------------------------
    label = lv_ref[0]                                 # (BM, 2T)
    valid = lv_ref[1]                                 # (BM, 2T), 0/1, xy-broadcast
    l_all = _smooth_l1(pred_best - label)
    reg_sum = jnp.sum(jnp.where(row_ok, l_all * valid, 0.0))

    # ---- NLL + endpoint smooth-L1 of the selected mode (lane-parallel over K) ---
    sel = jnp.logical_and(row_ok, kiota == best_id)   # (BM, K) bool
    nll_sum = jnp.sum(jnp.where(sel, -sm_ref[0], 0.0))
    end_all = _smooth_l1(pdx) + _smooth_l1(pdy)       # per-mode endpoint loss
    end_sum = jnp.sum(jnp.where(sel, end_all, 0.0))

    # ---- write this chunk's partials into row 0, lanes 0..2 of its tile --------
    r = lax.broadcasted_iota(jnp.int32, (8, 128), 0)
    c = lax.broadcasted_iota(jnp.int32, (8, 128), 1)
    tile = jnp.where((r == 0) & (c == 0), reg_sum,
           jnp.where((r == 0) & (c == 1), nll_sum,
           jnp.where((r == 0) & (c == 2), end_sum, 0.0)))
    out_ref[...] = tile


def trajectory_loss(prediction, log_prob, valid, label, *, block_m=2048):
    """prediction (M,K,T,2), log_prob (M,K), valid (M,T,1), label (M,T,2) -> scalar."""
    M, K, T, D = prediction.shape
    TD = T * D
    KTD = K * TD
    T2 = T * D  # lanes of label/valid after xy-broadcast

    f32 = jnp.float32
    # Contiguous (free) reshape of the big stream; M stays on sublanes.
    pred2 = prediction.reshape(M, KTD).astype(f32)

    # Small streams, stacked on a leading axis so in-kernel access is a
    # leading-index load (no unaligned lane extracts, single DMA each).
    label2 = label.reshape(M, T2).astype(f32)
    valid2 = jnp.broadcast_to(valid.astype(f32), (M, T, D)).reshape(M, T2)
    lv = jnp.stack([label2, valid2], axis=0)                       # (2, M, 2T)

    # Endpoint diffs hoisted out of the kernel (tiny strided slices in XLA).
    pdx = (prediction[:, :, -1, 0] - label[:, -1, 0][:, None]).astype(f32)   # (M, K)
    pdy = (prediction[:, :, -1, 1] - label[:, -1, 1][:, None]).astype(f32)   # (M, K)
    sm = jnp.stack([log_prob.astype(f32), pdx, pdy], axis=0)       # (3, M, K)

    # Block over M; a partial last block is masked in-kernel via the row index.
    bm = min(block_m, M)
    if bm < M:
        bm = max(8, (bm // 8) * 8)
    nblk = pl.cdiv(M, bm)

    kernel = functools.partial(_traj_loss_kernel, M=M, K=K, TD=TD, BM=bm)

    cost = pl.CostEstimate(
        flops=M * (2 * KTD + 10 * T2 + 8 * K),
        transcendentals=0,
        bytes_accessed=4 * M * (KTD + 2 * T2 + 3 * K) + nblk * 8 * 128 * 4,
    )

    out = pl.pallas_call(
        kernel,
        out_shape=jax.ShapeDtypeStruct((nblk * 8, 128), f32),
        grid=(nblk,),
        in_specs=[
            pl.BlockSpec((bm, KTD), lambda i: (i, 0)),
            pl.BlockSpec((2, bm, T2), lambda i: (0, i, 0)),
            pl.BlockSpec((3, bm, K), lambda i: (0, i, 0)),
        ],
        out_specs=pl.BlockSpec((8, 128), lambda i: (i, 0)),
        compiler_params=pltpu.CompilerParams(
            dimension_semantics=("parallel",),      # engages both TCs on v7x
            vmem_limit_bytes=32 * 1024 * 1024,
        ),
        cost_estimate=cost,
    )(pred2, lv, sm)

    # Combine per-chunk partials (tiny) and apply the torch denominators.
    parts = out.reshape(nblk, 8, 128)
    reg_sum = jnp.sum(parts[:, 0, 0])
    nll_sum = jnp.sum(parts[:, 0, 1])
    end_sum = jnp.sum(parts[:, 0, 2])

    denom = jnp.sum(valid.astype(f32)) * 2.0          # valid.sum() * 2, computed once
    return reg_sum / denom + nll_sum / jnp.float32(M) + end_sum / jnp.float32(2 * M)


def trajectory_loss_ref(prediction, log_prob, valid, label):
    # Pure-JAX mirror of the PyTorch forward (for correctness check).
    M = prediction.shape[0]
    norms = jnp.linalg.norm(prediction[:, :, -1] - label[:, -1][:, None], axis=-1)
    best_ids = jnp.argmin(norms, axis=-1)
    sel = prediction[jnp.arange(M), best_ids]                     # (M, T, 2)
    l_reg = _smooth_l1(sel - label)
    loss = jnp.sum(l_reg * valid) / (jnp.sum(valid) * 2.0)
    loss += jnp.mean(-log_prob[jnp.arange(M), best_ids])
    loss += jnp.mean(_smooth_l1(sel[:, -1] - label[:, -1]))
    return loss


if __name__ == "__main__":
    # Small shapes; block_m=16 with M=40 exercises multi-chunk + partial-tail masking.
    M, K, T, D = 40, 6, 8, 2
    key = jax.random.PRNGKey(0)
    k1, k2, k3, k4 = jax.random.split(key, 4)

    prediction = 2.0 * jax.random.normal(k1, (M, K, T, D), dtype=jnp.float32)
    label = 2.0 * jax.random.normal(k2, (M, T, D), dtype=jnp.float32)
    valid = (jax.random.uniform(k3, (M, T, 1)) > 0.3).astype(jnp.float32)
    logits = jax.random.normal(k4, (M, K), dtype=jnp.float32)
    log_prob = jax.nn.log_softmax(logits, axis=-1)

    loss = trajectory_loss(prediction, log_prob, valid, label, block_m=16)
    loss = jax.block_until_ready(loss)

    ref = jax.block_until_ready(trajectory_loss_ref(prediction, log_prob, valid, label))
    assert jnp.allclose(loss, ref, rtol=1e-4, atol=1e-4), (loss, ref)

    print("KERNEL_OK")
</pallas_src>

<mosaic_0001>
module attributes {stable_mosaic.version = 11 : i64} {
  func.func @_traj_loss_kernel(%arg0: i32, %arg1: memref<16x96xf32, #tpu.memory_space<vmem>>, %arg2: memref<2x16x16xf32, #tpu.memory_space<vmem>>, %arg3: memref<3x16x6xf32, #tpu.memory_space<vmem>>, %arg4: memref<8x128xf32, #tpu.memory_space<vmem>>) attributes {dimension_semantics = [#tpu.dimension_semantics<parallel>], iteration_bounds = array<i64: 3>, scalar_prefetch = 0 : i64, scratch_operands = 0 : i64, tpu.core_type = #tpu.core_type<tc>, window_params = [{transform_indices = @transform_0, window_bounds = array<i64: 16, 96>}, {transform_indices = @transform_1, window_bounds = array<i64: 2, 16, 16>}, {transform_indices = @transform_2, window_bounds = array<i64: 3, 16, 6>}, {transform_indices = @transform_3, window_bounds = array<i64: 8, 128>}]} {
    %c1 = arith.constant 1 : index
    %c0 = arith.constant 0 : index
    %c0_0 = arith.constant 0 : index
    %0 = vector.load %arg3[%c1, %c0, %c0_0] : memref<3x16x6xf32, #tpu.memory_space<vmem>>, vector<1x16x6xf32>
    %1 = vector.shape_cast %0 : vector<1x16x6xf32> to vector<16x6xf32>
    %c2 = arith.constant 2 : index
    %c0_1 = arith.constant 0 : index
    %c0_2 = arith.constant 0 : index
    %2 = vector.load %arg3[%c2, %c0_1, %c0_2] : memref<3x16x6xf32, #tpu.memory_space<vmem>>, vector<1x16x6xf32>
    %3 = vector.shape_cast %2 : vector<1x16x6xf32> to vector<16x6xf32>
    %4 = arith.mulf %1, %1 : vector<16x6xf32>
    %5 = arith.mulf %3, %3 : vector<16x6xf32>
    %6 = arith.addf %4, %5 : vector<16x6xf32>
    %cst = arith.constant dense<0x7F800000> : vector<16xf32>
    %7 = vector.multi_reduction <minimumf>, %6, %cst [1] : vector<16x6xf32> to vector<16xf32>
    %8 = vector.shape_cast %7 : vector<16xf32> to vector<16x1xf32>
    %9 = tpu.iota {dimensions = array<i32: 1>} : vector<16x6xi32>
    %10 = vector.broadcast %8 : vector<16x1xf32> to vector<16x6xf32>
    %11 = arith.cmpf oeq, %6, %10 : vector<16x6xf32>
    %c6_i32 = arith.constant 6 : i32
    %12 = vector.broadcast %c6_i32 : i32 to vector<16x6xi32>
    %13 = arith.select %11, %9, %12 : vector<16x6xi1>, vector<16x6xi32>
    %cst_3 = arith.constant dense<2147483647> : vector<16xi32>
    %14 = vector.multi_reduction <minsi>, %13, %cst_3 [1] : vector<16x6xi32> to vector<16xi32>
    %15 = vector.shape_cast %14 : vector<16xi32> to vector<16x1xi32>
    %16 = vector.shape_cast %15 : vector<16x1xi32> to vector<16x1xi32>
    %17 = vector.broadcast %16 : vector<16x1xi32> to vector<16x16xi32>
    %c0_4 = arith.constant 0 : index
    %c0_5 = arith.constant 0 : index
    %18 = vector.load %arg1[%c0_4, %c0_5] : memref<16x96xf32, #tpu.memory_space<vmem>>, vector<16x16xf32>
    %c1_i32 = arith.constant 1 : i32
    %19 = vector.broadcast %c1_i32 : i32 to vector<16x16xi32>
    %20 = arith.cmpi eq, %17, %19 : vector<16x16xi32>
    %c0_6 = arith.constant 0 : index
    %c16 = arith.constant 16 : index
    %21 = vector.load %arg1[%c0_6, %c16] : memref<16x96xf32, #tpu.memory_space<vmem>>, vector<16x16xf32>
    %22 = arith.select %20, %21, %18 : vector<16x16xi1>, vector<16x16xf32>
    %c2_i32 = arith.constant 2 : i32
    %23 = vector.broadcast %c2_i32 : i32 to vector<16x16xi32>
    %24 = arith.cmpi eq, %17, %23 : vector<16x16xi32>
    %c0_7 = arith.constant 0 : index
    %c32 = arith.constant 32 : index
    %25 = vector.load %arg1[%c0_7, %c32] : memref<16x96xf32, #tpu.memory_space<vmem>>, vector<16x16xf32>
    %26 = arith.select %24, %25, %22 : vector<16x16xi1>, vector<16x16xf32>
    %c3_i32 = arith.constant 3 : i32
    %27 = vector.broadcast %c3_i32 : i32 to vector<16x16xi32>
    %28 = arith.cmpi eq, %17, %27 : vector<16x16xi32>
    %c0_8 = arith.constant 0 : index
    %c48 = arith.constant 48 : index
    %29 = vector.load %arg1[%c0_8, %c48] : memref<16x96xf32, #tpu.memory_space<vmem>>, vector<16x16xf32>
    %30 = arith.select %28, %29, %26 : vector<16x16xi1>, vector<16x16xf32>
    %c4_i32 = arith.constant 4 : i32
    %31 = vector.broadcast %c4_i32 : i32 to vector<16x16xi32>
    %32 = arith.cmpi eq, %17, %31 : vector<16x16xi32>
    %c0_9 = arith.constant 0 : index
    %c64 = arith.constant 64 : index
    %33 = vector.load %arg1[%c0_9, %c64] : memref<16x96xf32, #tpu.memory_space<vmem>>, vector<16x16xf32>
    %34 = arith.select %32, %33, %30 : vector<16x16xi1>, vector<16x16xf32>
    %c5_i32 = arith.constant 5 : i32
    %35 = vector.broadcast %c5_i32 : i32 to vector<16x16xi32>
    %36 = arith.cmpi eq, %17, %35 : vector<16x16xi32>
    %c0_10 = arith.constant 0 : index
    %c80 = arith.constant 80 : index
    %37 = vector.load %arg1[%c0_10, %c80] : memref<16x96xf32, #tpu.memory_space<vmem>>, vector<16x16xf32>
    %38 = arith.select %36, %37, %34 : vector<16x16xi1>, vector<16x16xf32>
    %c16_i32 = arith.constant 16 : i32
    %39 = arith.muli %arg0, %c16_i32 : i32
    %40 = tpu.iota {dimensions = array<i32: 0>} : vector<16x1xi32>
    %41 = vector.broadcast %39 : i32 to vector<16x1xi32>
    %42 = arith.addi %41, %40 : vector<16x1xi32>
    %c40_i32 = arith.constant 40 : i32
    %43 = vector.broadcast %c40_i32 : i32 to vector<16x1xi32>
    %44 = arith.cmpi slt, %42, %43 : vector<16x1xi32>
    %c0_11 = arith.constant 0 : index
    %c0_12 = arith.constant 0 : index
    %c0_13 = arith.constant 0 : index
    %45 = vector.load %arg2[%c0_11, %c0_12, %c0_13] : memref<2x16x16xf32, #tpu.memory_space<vmem>>, vector<1x16x16xf32>
    %46 = vector.shape_cast %45 : vector<1x16x16xf32> to vector<16x16xf32>
    %c1_14 = arith.constant 1 : index
    %c0_15 = arith.constant 0 : index
    %c0_16 = arith.constant 0 : index
    %47 = vector.load %arg2[%c1_14, %c0_15, %c0_16] : memref<2x16x16xf32, #tpu.memory_space<vmem>>, vector<1x16x16xf32>
    %48 = vector.shape_cast %47 : vector<1x16x16xf32> to vector<16x16xf32>
    %49 = arith.subf %38, %46 : vector<16x16xf32>
    %50 = math.absf %49 : vector<16x16xf32>
    %cst_17 = arith.constant 1.000000e+00 : f32
    %51 = vector.broadcast %cst_17 : f32 to vector<16x16xf32>
    %52 = arith.cmpf olt, %50, %51 : vector<16x16xf32>
    %cst_18 = arith.constant 5.000000e-01 : f32
    %53 = vector.broadcast %cst_18 : f32 to vector<16x16xf32>
    %54 = arith.mulf %53, %50 : vector<16x16xf32>
    %55 = arith.mulf %54, %50 : vector<16x16xf32>
    %cst_19 = arith.constant 5.000000e-01 : f32
    %56 = vector.broadcast %cst_19 : f32 to vector<16x16xf32>
    %57 = arith.subf %50, %56 : vector<16x16xf32>
    %58 = arith.select %52, %55, %57 : vector<16x16xi1>, vector<16x16xf32>
    %59 = arith.mulf %58, %48 : vector<16x16xf32>
    %cst_20 = arith.constant 0.000000e+00 : f32
    %60 = vector.shape_cast %44 : vector<16x1xi1> to vector<16x1xi1>
    %61 = vector.broadcast %60 : vector<16x1xi1> to vector<16x16xi1>
    %62 = vector.broadcast %cst_20 : f32 to vector<16x16xf32>
    %63 = arith.select %61, %59, %62 : vector<16x16xi1>, vector<16x16xf32>
    %64 = vector.shape_cast %63 : vector<16x16xf32> to vector<1x16x16xf32>
    %cst_21 = arith.constant dense<0.000000e+00> : vector<1xf32>
    %65 = vector.multi_reduction <add>, %64, %cst_21 [1, 2] : vector<1x16x16xf32> to vector<1xf32>
    %66 = vector.shape_cast %65 : vector<1xf32> to vector<1x1x1xf32>
    %67 = vector.extract %66[0, 0, 0] : f32 from vector<1x1x1xf32>
    %68 = vector.broadcast %15 : vector<16x1xi32> to vector<16x6xi32>
    %69 = arith.cmpi eq, %9, %68 : vector<16x6xi32>
    %70 = vector.broadcast %44 : vector<16x1xi1> to vector<16x6xi1>
    %71 = arith.andi %70, %69 : vector<16x6xi1>
    %c0_22 = arith.constant 0 : index
    %c0_23 = arith.constant 0 : index
    %c0_24 = arith.constant 0 : index
    %72 = vector.load %arg3[%c0_22, %c0_23, %c0_24] : memref<3x16x6xf32, #tpu.memory_space<vmem>>, vector<1x16x6xf32>
    %73 = vector.shape_cast %72 : vector<1x16x6xf32> to vector<16x6xf32>
    %cst_25 = arith.constant 0.000000e+00 : f32
    %74 = vector.broadcast %cst_25 : f32 to vector<16x6xf32>
    %75 = arith.subf %74, %73 : vector<16x6xf32>
    %cst_26 = arith.constant 0.000000e+00 : f32
    %76 = vector.broadcast %cst_26 : f32 to vector<16x6xf32>
    %77 = arith.select %71, %75, %76 : vector<16x6xi1>, vector<16x6xf32>
    %78 = vector.shape_cast %77 : vector<16x6xf32> to vector<1x16x6xf32>
    %cst_27 = arith.constant dense<0.000000e+00> : vector<1xf32>
    %79 = vector.multi_reduction <add>, %78, %cst_27 [1, 2] : vector<1x16x6xf32> to vector<1xf32>
    %80 = vector.shape_cast %79 : vector<1xf32> to vector<1x1x1xf32>
    %81 = vector.extract %80[0, 0, 0] : f32 from vector<1x1x1xf32>
    %82 = math.absf %1 : vector<16x6xf32>
    %cst_28 = arith.constant 1.000000e+00 : f32
    %83 = vector.broadcast %cst_28 : f32 to vector<16x6xf32>
    %84 = arith.cmpf olt, %82, %83 : vector<16x6xf32>
    %cst_29 = arith.constant 5.000000e-01 : f32
    %85 = vector.broadcast %cst_29 : f32 to vector<16x6xf32>
    %86 = arith.mulf %85, %82 : vector<16x6xf32>
    %87 = arith.mulf %86, %82 : vector<16x6xf32>
    %cst_30 = arith.constant 5.000000e-01 : f32
    %88 = vector.broadcast %cst_30 : f32 to vector<16x6xf32>
    %89 = arith.subf %82, %88 : vector<16x6xf32>
    %90 = arith.select %84, %87, %89 : vector<16x6xi1>, vector<16x6xf32>
    %91 = math.absf %3 : vector<16x6xf32>
    %cst_31 = arith.constant 1.000000e+00 : f32
    %92 = vector.broadcast %cst_31 : f32 to vector<16x6xf32>
    %93 = arith.cmpf olt, %91, %92 : vector<16x6xf32>
    %cst_32 = arith.constant 5.000000e-01 : f32
    %94 = vector.broadcast %cst_32 : f32 to vector<16x6xf32>
    %95 = arith.mulf %94, %91 : vector<16x6xf32>
    %96 = arith.mulf %95, %91 : vector<16x6xf32>
    %cst_33 = arith.constant 5.000000e-01 : f32
    %97 = vector.broadcast %cst_33 : f32 to vector<16x6xf32>
    %98 = arith.subf %91, %97 : vector<16x6xf32>
    %99 = arith.select %93, %96, %98 : vector<16x6xi1>, vector<16x6xf32>
    %100 = arith.addf %90, %99 : vector<16x6xf32>
    %cst_34 = arith.constant 0.000000e+00 : f32
    %101 = vector.broadcast %cst_34 : f32 to vector<16x6xf32>
    %102 = arith.select %71, %100, %101 : vector<16x6xi1>, vector<16x6xf32>
    %103 = vector.shape_cast %102 : vector<16x6xf32> to vector<1x16x6xf32>
    %cst_35 = arith.constant dense<0.000000e+00> : vector<1xf32>
    %104 = vector.multi_reduction <add>, %103, %cst_35 [1, 2] : vector<1x16x6xf32> to vector<1xf32>
    %105 = vector.shape_cast %104 : vector<1xf32> to vector<1x1x1xf32>
    %106 = vector.extract %105[0, 0, 0] : f32 from vector<1x1x1xf32>
    %107 = tpu.iota {dimensions = array<i32: 0>} : vector<8x128xi32>
    %108 = tpu.iota {dimensions = array<i32: 1>} : vector<8x128xi32>
    %c0_i32 = arith.constant 0 : i32
    %109 = vector.broadcast %c0_i32 : i32 to vector<8x128xi32>
    %110 = arith.cmpi eq, %107, %109 : vector<8x128xi32>
    %c0_i32_36 = arith.constant 0 : i32
    %111 = vector.broadcast %c0_i32_36 : i32 to vector<8x128xi32>
    %112 = arith.cmpi eq, %108, %111 : vector<8x128xi32>
    %113 = arith.andi %110, %112 : vector<8x128xi1>
    %c0_i32_37 = arith.constant 0 : i32
    %114 = vector.broadcast %c0_i32_37 : i32 to vector<8x128xi32>
    %115 = arith.cmpi eq, %107, %114 : vector<8x128xi32>
    %c1_i32_38 = arith.constant 1 : i32
    %116 = vector.broadcast %c1_i32_38 : i32 to vector<8x128xi32>
    %117 = arith.cmpi eq, %108, %116 : vector<8x128xi32>
    %118 = arith.andi %115, %117 : vector<8x128xi1>
    %c0_i32_39 = arith.constant 0 : i32
    %119 = vector.broadcast %c0_i32_39 : i32 to vector<8x128xi32>
    %120 = arith.cmpi eq, %107, %119 : vector<8x128xi32>
    %c2_i32_40 = arith.constant 2 : i32
    %121 = vector.broadcast %c2_i32_40 : i32 to vector<8x128xi32>
    %122 = arith.cmpi eq, %108, %121 : vector<8x128xi32>
    %123 = arith.andi %120, %122 : vector<8x128xi1>
    %cst_41 = arith.constant 0.000000e+00 : f32
    %124 = vector.broadcast %106 : f32 to vector<8x128xf32>
    %125 = vector.broadcast %cst_41 : f32 to vector<8x128xf32>
    %126 = arith.select %123, %124, %125 : vector<8x128xi1>, vector<8x128xf32>
    %127 = vector.broadcast %81 : f32 to vector<8x128xf32>
    %128 = arith.select %118, %127, %126 : vector<8x128xi1>, vector<8x128xf32>
    %129 = vector.broadcast %67 : f32 to vector<8x128xf32>
    %130 = arith.select %113, %129, %128 : vector<8x128xi1>, vector<8x128xf32>
    %c0_42 = arith.constant 0 : index
    %c0_43 = arith.constant 0 : index
    %131 = vector.load %arg4[%c0_42, %c0_43] : memref<8x128xf32, #tpu.memory_space<vmem>>, vector<8x128xf32>
    tpu.vector_store %arg4[%c0_42, %c0_43], %130 {strides = array<i32>} : memref<8x128xf32, #tpu.memory_space<vmem>>, vector<8x128xf32>,
    return
  }
  func.func @transform_0(%arg0: i32) -> (i32, i32) {
    %c0_i32 = arith.constant 0 : i32
    %c0_i32_0 = arith.constant 0 : i32
    return %arg0, %c0_i32 : i32, i32
  }
  func.func @transform_1(%arg0: i32) -> (i32, i32, i32) {
    %c0_i32 = arith.constant 0 : i32
    %c0_i32_0 = arith.constant 0 : i32
    %c0_i32_1 = arith.constant 0 : i32
    return %c0_i32, %arg0, %c0_i32_0 : i32, i32, i32
  }
  func.func @transform_2(%arg0: i32) -> (i32, i32, i32) {
    %c0_i32 = arith.constant 0 : i32
    %c0_i32_0 = arith.constant 0 : i32
    %c0_i32_1 = arith.constant 0 : i32
    return %c0_i32, %arg0, %c0_i32_0 : i32, i32, i32
  }
  func.func @transform_3(%arg0: i32) -> (i32, i32) {
    %c0_i32 = arith.constant 0 : i32
    %c0_i32_0 = arith.constant 0 : i32
    return %arg0, %c0_i32 : i32, i32
  }
}

</mosaic_0001>

<bundles_post_ra>
// kernel: tpu_custom_call.1
= control target key start
LH: loop header
LB: loop body
LE: loop exit
PB: predicated region body
PF: predicated region fallthrough
CT: control target
= control target key end

     0   :  { %8 = vsyncpa [#allocation5], 0  ;;  %s1761_s0 = inlined_call_operand.vmem [shape: f32[40,96], index: 0, kind: input, shape index: {}]   ;;  %s1762_s1 = inlined_call_operand.vmem [shape: f32[2,40,16], index: 1, kind: input, shape index: {}]   ;;  %s1763_s2 = inlined_call_operand.vmem [shape: f32[3,40,6], index: 2, kind: input, shape index: {}]   ;;  %s1764_s3 = inlined_call_operand.hbm [shape: f32[24,128], index: 3, kind: output, shape index: {}]  }
   0x1   :  { %10 = vsyncpa [#allocation5 + $0x1], 0  ;;  %s1427_s12 = smov 0   ;;  %s1429_s13 = smov 0  }
   0x2   :  { %s1431_s14 = smov 0   ;;  %s1433_s15 = smov 0  }
   0x3 LB: > { %s1448_s16 = sadd.s32 4294967295, %s1337_s15   ;;  %s974_s17 = sadd.s32 4294967294, %s1337_s15   ;;  %s1337_s15 = sphi %s1433_s15, %s1780_s15   ;;  %s1333_s14 = sphi %s1431_s14, %s1779_s14   ;;  %s1329_s13 = sphi %s1429_s13, %s1778_s13   ;;  %s1325_s12 = sphi %s1427_s12, %s1777_s12  }
   0x4   : > { %s1452_s18 = sadd.s32 1, %s1337_s15   ;;  %s49_s19 = sadd.s32 1, %s1333_s14 }
   0x5   : > { %s46_s20 = ssub.s32 %s1337_s15, %s1452_s18  ;;  %p56_p0 = scmp.ne.s32.totalorder %s1333_s14, %s1329_s13 }
   0x6   : > { %p47_p1 = scmp.eq.s32.totalorder %s46_s20, 0  ;;  %p57_p2 = scmp.eq.s32.totalorder %s1337_s15, 0 }
   0x7   : > { %p112_p3 = scmp.eq.s32.totalorder %s1448_s16, 2  ;;  %p117_p4 = scmp.ne.s32.totalorder %s1329_s13, %s1325_s12 }
   0x8   : > { %s1464_s21 = scalar_select %p47_p1, %s1333_s14, %s49_s19  }
   0x9   : > { %p1466_p5 = por %p57_p2, %p56_p0  ;;  %p1470_p6 = por %p112_p3, %p56_p0 }
   0xa   : > { %p118_p7 = scmp.eq.s32.totalorder %s974_s17, 2  ;;  %p976_p9 = scmp.ge.s32.totalorder %s1337_s15, 3 }
   0xc   : > { %p1474_p8 = por %p118_p7, %p117_p4  ;;  %134 = sbr.rel (%p976_p9) target bundleno = 132 (0x84), region = 16 }
  0x13   : > { %154 = sbr.rel (!%p1466_p5) target bundleno = 75 (0x4b), region = 24  ;;  %s156_s25 = sand.u32 (%p1466_p5), 1, %s1333_s14  }
  0x14   : > { %s978_s26 = sshll.u32 (%p1466_p5), %s1337_s15, 1  ;;  %s977_s27 = sshll.u32 (%p1466_p5), %s156_s25, 5 }
  0x15   : > { %s160_s28 = ssub.s32 (%p1466_p5), 5, %s978_s26  ;;  %s1027_s29 = sshll.u32 (%p1466_p5), %s1337_s15, 4 }
  0x16   : > { %p161_p10 = scmp.lt.s32.totalorder (%p1466_p5), %s160_s28, 2  ;;  %s1489_s5 = scalar_lea.vmem (%p1466_p5), %s1762_s1, %s1027_s29  }
  0x17   : > { %s1492_s7 = scalar_lea.vmem (%p1466_p5), [#allocation2], %s977_s27  }
  0x1a   : > { %s1782_s28 = smov (!%p161_p10, %s160_s28), 2 }
  0x1b   : > { %s979_s6 = sshll.u32 %s1782_s28, 8 }
  0x1c   : > { %p982_p11 = scmp.eq.s32.totalorder %s979_s6, 0 }
  0x1d   : > { %s1495_s8 = sshrl.u32 (!%p982_p11), %s1782_s28, 1 }
  0x1e   : > { %169 = sbr.rel (%p982_p11) target bundleno = 75 (0x4b), region = 28  ;;  %p983_p12 = scmp.le.s32.totalorder (!%p982_p11), %s1495_s8, 0 }
  0x25   : > { %890 = sbr.rel (%p983_p12) target bundleno = 54 (0x36), region = 200  ;;  %s1768_s9 = smov (!%p983_p12), %s1492_s7 }
  0x26   : > { %s1769_s10 = smov (!%p983_p12), %s1489_s5  ;;  %s1504_s11 = smov (!%p983_p12), 0  }
  0x27   : > { %s1351_s17 = smov (!%p983_p12), 0  }
  0x2c LB: >> { %v239_v0 = vld [vmem:[%s1345_s10] sm:$0xff]  ;;  %v241_v1 = vld [vmem:[%s1345_s10 + $0x8] sm:$0xff]  ;;  %s247_s19 = sadd.s32 1, %s1349_s11  ;;  %v245_v3 = vld [vmem:[%s1345_s10 + $0x30] sm:$0xff]  ;;  %s233_s17 = sadd.s32 1, %s1353_s17   ;;  %s1353_s17 = sphi %s1351_s17, %s233_s17   ;;  %s1349_s11 = sphi %s1504_s11, %s1770_s11   ;;  %s1345_s10 = sphi %s1769_s10, %s252_s10   ;;  %s1341_s9 = sphi %s1768_s9, %s253_s9  }
  0x2d   : >> { %v243_v2 = vld [vmem:[%s1345_s10 + $0x28] sm:$0xff]  ;;  %240 = vst [vmem:[%s1341_s9] sm:$0xff] %v239_v0  ;;  %242 = vst [vmem:[%s1341_s9 + $0x8] sm:$0xff] %v241_v1  ;;  %p248_p13 = scmp.ge.s32.totalorder %s247_s19, %s1495_s8  ;;  %p232_p0 = scmp.ge.s32.totalorder %s233_s17, %s1495_s8 }
  0x2e   : >> { %244 = vst [vmem:[%s1341_s9 + $0x10] sm:$0xff] %v243_v2  ;;  %246 = vst [vmem:[%s1341_s9 + $0x18] sm:$0xff] %v245_v3 }
  0x2f   : >> { %s1784_s19 = smov (%p248_p13, %s247_s19), 0  ;;  %235 = sbr.rel (!%p232_p0) target bundleno = 44 (0x2c), region = 206 }
  0x30   : >> { %s984_s20 = sshll.u32 %s1784_s19, 4  ;;  %s1770_s11 = smov %s1784_s19 }
  0x31   : >> { %s252_s10 = scalar_lea.vmem %s1489_s5, %s984_s20   ;;  %s253_s9 = scalar_lea.vmem %s1492_s7, %s984_s20 [#allocation2]  }
  0x36 PF: > { %s1520_s25 = sand.u32 1, %s1782_s28   ;;  %s1028_s26 = sshll.u32 %s1495_s8, 4 }
  0x37   : > { %s1524_s27 = scalar_lea.vmem %s1489_s5, %s1028_s26   ;;  %s260_s29 = scalar_lea.vmem %s1492_s7, %s1028_s26 [#allocation2]  }
  0x38   : > { %p989_p1 = scmp.le.s32.totalorder %s1520_s25, 0 }
  0x39   : > { %s1355_s30 = smov (!%p989_p1), %s260_s29   ;;  %s1359_s4 = smov (!%p989_p1), %s1524_s27  }
  0x3a   : > { %904 = sbr.rel (%p989_p1) target bundleno = 75 (0x4b), region = 211  ;;  %s1363_s6 = smov (!%p989_p1), 0  }
  0x3b   : > { %s1367_s11 = smov (!%p989_p1), 0  }
  0x41 LB: >> { %v270_v4 = vld [vmem:[%s1361_s4] sm:$0xff]  ;;  %v272_v5 = vld [vmem:[%s1361_s4 + $0x28] sm:$0xff]  ;;  %s274_s28 = sadd.s32 1, %s1365_s6  ;;  %s264_s11 = sadd.s32 1, %s1369_s11   ;;  %s1369_s11 = sphi %s1367_s11, %s264_s11   ;;  %s1365_s6 = sphi %s1363_s6, %s1364_s6   ;;  %s1361_s4 = sphi %s1359_s4, %s279_s4   ;;  %s1357_s30 = sphi %s1355_s30, %s280_s30  }
  0x42   : >> { %271 = vst [vmem:[%s1357_s30] sm:$0xff] %v270_v4  ;;  %273 = vst [vmem:[%s1357_s30 + $0x10] sm:$0xff] %v272_v5  ;;  %p275_p2 = scmp.ge.s32.totalorder %s274_s28, %s1520_s25  ;;  %p263_p3 = scmp.ge.s32.totalorder %s264_s11, %s1520_s25 }
  0x44   : >> { %s1786_s28 = smov (%p275_p2, %s274_s28), 0  ;;  %266 = sbr.rel (!%p263_p3) target bundleno = 65 (0x41), region = 217 }
  0x45   : >> { %s990_s5 = sshll.u32 %s1786_s28, 3  ;;  %s1364_s6 = smov %s1786_s28  }
  0x46   : >> { %s279_s4 = scalar_lea.vmem %s1524_s27, %s990_s5   ;;  %s280_s30 = scalar_lea.vmem %s260_s29, %s990_s5 [#allocation2]  }
  0x4b PF: > { %286 = sbr.rel (!%p1466_p5) target bundleno = 132 (0x84), region = 76  ;;  %s288_s7 = sand.u32 (%p1466_p5), 1, %s1333_s14  }
  0x4c   : > { %s992_s8 = sshll.u32 (%p1466_p5), %s1337_s15, 1  ;;  %s1033_s9 = smul.u32 (%p1466_p5), 48, %s288_s7 }
  0x4d   : > { %s292_s10 = ssub.s32 (%p1466_p5), 5, %s992_s8  ;;  %s1030_s17 = sshll.u32 (%p1466_p5), %s1337_s15, 4 }
  0x4e   : > { %p293_p4 = scmp.lt.s32.totalorder (%p1466_p5), %s292_s10, 2  ;;  %s1540_s26 = scalar_lea.vmem (%p1466_p5), %s1763_s2, %s1030_s17  }
  0x4f   : > { %s1545_s22 = scalar_lea.vmem (%p1466_p5), [#allocation3], %s1033_s9  }
  0x52   : > { %s1788_s10 = smov (!%p293_p4, %s292_s10), 2 }
  0x53   : > { %s295_s25 = smul.u32 384, %s1788_s10 }
  0x55   : > { %p995_p5 = scmp.eq.s32.totalorder %s295_s25, 0 }
  0x56   : > { %s1548_s27 = sshrl.u32 (!%p995_p5), %s1788_s10, 1 }
  0x57   : > { %301 = sbr.rel (%p995_p5) target bundleno = 132 (0x84), region = 80  ;;  %p996_p7 = scmp.le.s32.totalorder (!%p995_p5), %s1548_s27, 0 }
  0x5e   : > { %918 = sbr.rel (%p996_p7) target bundleno = 111 (0x6f), region = 222  ;;  %s1771_s29 = smov (!%p996_p7), %s1545_s22 }
  0x5f   : > { %s1772_s30 = smov (!%p996_p7), %s1540_s26  ;;  %s1557_s4 = smov (!%p996_p7), 0  }
  0x60   : > { %s1559_s6 = smov (!%p996_p7), 0  }
  0x65 LB: >> { %v377_v6 = vld [vmem:[%s1377_s30] sm:$0xff]  ;;  %v379_v7 = vld [vmem:[%s1377_s30 + $0x8] sm:$0xff]  ;;  %s389_s11 = sadd.s32 1, %s1381_s4  ;;  %v383_v9 = vld [vmem:[%s1377_s30 + $0x30] sm:$0xff]  ;;  %s371_s6 = sadd.s32 1, %s1385_s6   ;;  %s1385_s6 = sphi %s1559_s6, %s371_s6   ;;  %s1381_s4 = sphi %s1557_s4, %s1773_s4   ;;  %s1377_s30 = sphi %s1772_s30, %s394_s30   ;;  %s1373_s29 = sphi %s1771_s29, %s395_s29  }
  0x66   : >> { %v381_v8 = vld [vmem:[%s1377_s30 + $0x28] sm:$0xff]  ;;  %378 = vst [vmem:[%s1373_s29] sm:$0xff] %v377_v6  ;;  %380 = vst [vmem:[%s1373_s29 + $0x8] sm:$0xff] %v379_v7  ;;  %v385_v10 = vld [vmem:[%s1377_s30 + $0x50] sm:$0xff]  ;;  %p390_p9 = scmp.ge.s32.totalorder %s389_s11, %s1548_s27  ;;  %p370_p10 = scmp.ge.s32.totalorder %s371_s6, %s1548_s27 }
  0x67   : >> { %382 = vst [vmem:[%s1373_s29 + $0x10] sm:$0xff] %v381_v8  ;;  %v387_v11 = vld [vmem:[%s1377_s30 + $0x58] sm:$0xff]  ;;  %384 = vst [vmem:[%s1373_s29 + $0x18] sm:$0xff] %v383_v9 }
  0x68   : >> { %386 = vst [vmem:[%s1373_s29 + $0x20] sm:$0xff] %v385_v10  ;;  %388 = vst [vmem:[%s1373_s29 + $0x28] sm:$0xff] %v387_v11  ;;  %s1790_s11 = smov (%p390_p9, %s389_s11), 0  ;;  %373 = sbr.rel (!%p370_p10) target bundleno = 101 (0x65), region = 228 }
  0x69   : >> { %s997_s28 = sshll.u32 %s1790_s11, 4  ;;  %s1773_s4 = smov %s1790_s11 }
  0x6a   : >> { %s394_s30 = scalar_lea.vmem %s1540_s26, %s997_s28   ;;  %s395_s29 = scalar_lea.vmem %s1545_s22, %s997_s28 [#allocation3]  }
  0x6f PF: > { %s1578_s5 = sand.u32 1, %s1788_s10   ;;  %s1031_s7 = sshll.u32 %s1548_s27, 4 }
  0x70   : > { %s1582_s8 = scalar_lea.vmem %s1540_s26, %s1031_s7   ;;  %s1585_s9 = scalar_lea.vmem %s1545_s22, %s1031_s7 [#allocation3]  }
  0x71   : > { %p1002_p11 = scmp.le.s32.totalorder %s1578_s5, 0 }
  0x72   : > { %s1774_s17 = smov (!%p1002_p11), %s1585_s9  ;;  %s1391_s19 = smov (!%p1002_p11), %s1582_s8  }
  0x73   : > { %932 = sbr.rel (%p1002_p11) target bundleno = 132 (0x84), region = 233  ;;  %s1395_s20 = smov (!%p1002_p11), 0  }
  0x74   : > { %s1399_s25 = smov (!%p1002_p11), 0  }
  0x7a LB: >> { %v412_v12 = vld [vmem:[%s1393_s19] sm:$0xff]  ;;  %v414_v13 = vld [vmem:[%s1393_s19 + $0x28] sm:$0xff]  ;;  %v416_v14 = vld [vmem:[%s1393_s19 + $0x50] sm:$0xff]  ;;  %s418_s10 = sadd.s32 1, %s1397_s20  ;;  %s406_s25 = sadd.s32 1, %s1401_s25   ;;  %s1401_s25 = sphi %s1399_s25, %s406_s25   ;;  %s1397_s20 = sphi %s1395_s20, %s1396_s20   ;;  %s1393_s19 = sphi %s1391_s19, %s423_s19   ;;  %s1389_s17 = sphi %s1774_s17, %s424_s17  }
  0x7b   : >> { %413 = vst [vmem:[%s1389_s17] sm:$0xff] %v412_v12  ;;  %415 = vst [vmem:[%s1389_s17 + $0x10] sm:$0xff] %v414_v13  ;;  %p419_p12 = scmp.ge.s32.totalorder %s418_s10, %s1578_s5  ;;  %p405_p13 = scmp.ge.s32.totalorder %s406_s25, %s1578_s5 }
  0x7c   : >> { %417 = vst [vmem:[%s1389_s17 + $0x20] sm:$0xff] %v416_v14 }
  0x7d   : >> { %s1792_s10 = smov (%p419_p12, %s418_s10), 0  ;;  %408 = sbr.rel (!%p405_p13) target bundleno = 122 (0x7a), region = 239 }
  0x7e   : >> { %s1003_s26 = sshll.u32 %s1792_s10, 3  ;;  %s1396_s20 = smov %s1792_s10  }
  0x7f   : >> { %s423_s19 = scalar_lea.vmem %s1582_s8, %s1003_s26   ;;  %s424_s17 = scalar_lea.vmem %s1585_s9, %s1003_s26 [#allocation3]  }
  0x84 PF: > { %p1005_p0 = scmp.ge.s32.totalorder %s1337_s15, 1  ;;  %p429_p1 = scmp.lt.s32.totalorder %s1337_s15, 4 }
  0x86   : > { %p430_p2 = pnand %p1005_p0, %p429_p1 }
  0x87   : > { %s1602_s22 = sand.u32 (!%p430_p2), 1, %s1329_s13   ;;  %vm515_vm0 = vcmask (!%p430_p2), 48128   ;;  %v522_v27 = vlaneseq (!%p430_p2)  ;;  %s1008_s30 = sshll.u32 (!%p430_p2), %s1448_s16, 1 }
  0x88   : > { %433 = sbr.rel (%p430_p2) target bundleno = 1414 (0x586), region = 128  ;;  %p484_p3 = scmp.lt.s32.totalorder (!%p430_p2), %s1008_s30, 4 }
  0x89   : > { %s1034_s27 = smul.u32 (!%p430_p2), 48, %s1602_s22  ;;  %v1614_v28 = vand.u32 (!%p430_p2), 127, %v522_v27  ;;  %s1403_s5 = smov (!%p430_p2), 16   ;;  %v1634_v7 = vshrl.u32 (!%p430_p2), %v522_v27, 7 }
  0x8a   : > { %s1014_s7 = sshll.u32 (!%p430_p2), %s1448_s16, 4  ;;  %s1006_s8 = sshll.u32 (!%p430_p2), %s1602_s22, 5 }
  0x8b   : > { %s1605_s29 = scalar_lea.vmem (!%p430_p2), [#allocation3], %s1034_s27  ;;  %v624_v9 = vstv (!%p430_p2), %s1014_s7  ;;  %v623_v12 = vadd.s32 (!%p430_p2), 8, %v1634_v7  ;;  %s438_s9 = scalar_lea.vmem (!%p430_p2), [#allocation2], %s1006_s8 }
  0x8c   : > { %v1010_v15 = vld [vmem:[%s1605_s29 + $0x10] sm:$0xff] (!%p430_p2)  ;;  %v1012_v16 = vld [vmem:[%s1605_s29 + $0x20] sm:$0xff] (!%p430_p2)  ;;  %v1011_v17 = vld [vmem:[%s1605_s29 + $0x18] sm:$0xff] (!%p430_p2)  ;;  %v1637_v11 = vadd.s32 (!%p430_p2), %v624_v9, %v1634_v7  ;;  %s1404_s17 = smov (!%p430_p2), 80   ;;  %s1405_s19 = smov (!%p430_p2), 48  }
  0x8d   : > { %v509_v18 = vmul.f32 (!%p430_p2), %v1010_v15, %v1010_v15  ;;  %v511_v19 = vmul.f32 (!%p430_p2), %v1012_v16, %v1012_v16  ;;  %v1013_v20 = vld [vmem:[%s1605_s29 + $0x28] sm:$0xff] (!%p430_p2)  ;;  %v510_v21 = vmul.f32 (!%p430_p2), %v1011_v17, %v1011_v17  ;;  %v715_v47 = vand.u32 (!%p430_p2), 2147483647, %v1010_v15  ;;  %s1007_s20 = sshll.u32 (!%p430_p2), %s1602_s22, 3  ;;  %s1024_s26 = sshll.u32 (!%p430_p2), %s1448_s16, 7 }
  0x8e   : > { %v512_v22 = vmul.f32 (!%p430_p2), %v1013_v20, %v1013_v20  ;;  %v727_v48 = vand.u32 (!%p430_p2), 2147483647, %v1012_v16  ;;  %v716_v49 = vand.u32 (!%p430_p2), 2147483647, %v1011_v17  ;;  %v728_v52 = vand.u32 (!%p430_p2), 2147483647, %v1013_v20  ;;  %s1718_s11 = scalar_lea.hbm (!%p430_p2), %s1764_s3, %s1024_s26 }
  0x8f   : > { %v513_v23 = vadd.f32 %v511_v19, %v509_v18  ;;  %s1794_s30 = smov (!%p484_p3, %s1008_s30), 4  ;;  %v719_v50 = vmul.f32 0.5, %v715_v47  ;;  %v1019_v54 = vadd.f32 -0.5, %v715_v47  ;;  %vm717_vm5 = vcmp.lt.f32.partialorder %v715_v47, 1.0  ;;  %v697_v17 = vld [vmem:[%s1605_s29] sm:$0xff]  ;;  %s770_s16 = scalar_lea.sflag [#allocation5], %s1602_s22 }
  0x90   : > { %v514_v24 = vadd.f32 %v512_v22, %v510_v21  ;;  %s1009_s4 = sshll.u32 %s1794_s30, 3  ;;  %v731_v51 = vmul.f32 0.5, %v727_v48  ;;  %vm729_vm6 = vcmp.lt.f32.partialorder %v727_v48, 1.0  ;;  %v1021_v57 = vadd.f32 -0.5, %v727_v48 }
  0x91   : > { %v516_v25 = vsel %vm515_vm0, %v513_v23, inf  ;;  %s487_s28 = scalar_lea.vmem %s1761_s0, %s1009_s4  ;;  %v721_v53 = vmul.f32 %v719_v50, %v715_v47  ;;  %v720_v59 = vmul.f32 0.5, %v716_v49  ;;  %v732_v61 = vmul.f32 0.5, %v728_v52 }
  0x92   : > { %517 = vmin.xlane.f32.xlu0 %v516_v25  ;;  %v519_v26 = vsel %vm515_vm0, %v514_v24, inf  ;;  %v733_v55 = vmul.f32 %v731_v51, %v727_v48  ;;  %v1624_v56 = vld [vmem:[%s487_s28 + $0x8] sm:$0xff]  ;;  %v1626_v58 = vld [vmem:[%s487_s28] sm:$0xff]  ;;  %v1020_v0 = vadd.f32 -0.5, %v716_v49  ;;  %v1022_v1 = vadd.f32 -0.5, %v728_v52 }
  0x93   : > { %v725_v60 = vsel %vm717_vm5, %v721_v53, %v1019_v54  ;;  %v722_v63 = vmul.f32 %v720_v59, %v716_v49  ;;  %vm718_vm7 = vcmp.lt.f32.partialorder %v716_v49, 1.0  ;;  %vm730_vm8 = vcmp.lt.f32.partialorder %v728_v52, 1.0  ;;  %v1016_v59 = vld [vmem:[%s438_s9 + $0x18] sm:$0xff] }
  0x94   : > { %v737_v62 = vsel %vm729_vm6, %v733_v55, %v1021_v57  ;;  %v734_v2 = vmul.f32 %v732_v61, %v728_v52  ;;  %vm627_vm9 = vcmp.lt.s32.totalorder %v1637_v11, 40  ;;  %v1644_v20 = vadd.s32 %v624_v9, %v623_v12  ;;  %v629_v52 = vld [vmem:[%s438_s9] sm:$0xff]  ;;  %v630_v55 = vld [vmem:[%s438_s9 + $0x8] sm:$0xff]  ;;  %v1015_v57 = vld [vmem:[%s438_s9 + $0x10] sm:$0xff] }
  0x95   : > { %v739_v3 = vadd.f32 %v737_v62, %v725_v60  ;;  %v726_v4 = vsel %vm718_vm7, %v722_v63, %v1020_v0  ;;  %v699_v25 = vsub.f32 0.0, %v697_v17 }
  0x96   : > { %520 = vmin.xlane.f32.xlu0 %v519_v26  ;;  %v738_v5 = vsel %vm730_vm8, %v734_v2, %v1022_v1  ;;  %vm628_vm13 = vcmp.lt.s32.totalorder %v1644_v20, 40 }
  0x97   : > { %v740_v6 = vadd.f32 %v738_v5, %v726_v4 }
 0x11f   : > { %v518_v29 = vpop.xlane.xlu0 %517 }
 0x120   : > { %vm524_vm1 = vcmp.eq.f32.partialorder %v513_v23, %v518_v29  ;;  %v698_v23 = vld [vmem:[%s1605_s29 + $0x8] sm:$0xff]  ;;  %s478_s29 = scalar_lea.vmem [#allocation4], %s1007_s20 }
 0x121   : > { %v526_v30 = vsel %vm524_vm1, %v1614_v28, 6  ;;  %s783_s30 = sshll.u32 %s478_s29, 4  ;;  %s1720_s30 = int_to_ptr.vmem [resolvable:$true] %s783_s30 }
 0x122   : > { %v528_v31 = vsel %vm515_vm0, %v526_v30, 2147483647  ;;  %v700_v30 = vsub.f32 0.0, %v698_v23  ;;  %s1211_s28 = scalar_lea.vmem %s1720_s30, 128 }
 0x123   : > { %v521_v32 = vpop.xlane.xlu0 %520  ;;  %v530_v33 = vshra.s32 %v528_v31, 16  ;;  %v529_v39 = vand.u32 65535, %v528_v31  ;;  %p1212_p4 = scmp.ne.s32.totalorder %s1720_s30, %s1211_s28 }
 0x124   : > { %vm525_vm2 = vcmp.eq.f32.partialorder %v514_v24, %v521_v32 }
 0x125   : > { %v527_v34 = vsel %vm525_vm2, %v1614_v28, 6  ;;  %v532_v35 = vcvt.s32.f32 %v530_v33  ;;  %v531_v41 = vcvt.s32.f32 %v529_v39  ;;  %p1213_p5 = pnand %p1212_p4, %p1470_p6 }
 0x126   : > { %v543_v36 = vsel %vm515_vm0, %v527_v34, 2147483647 }
 0x127   : > { %533 = vmin.xlane.f32.xlu1 %v532_v35  ;;  %v545_v37 = vshra.s32 %v543_v36, 16  ;;  %v544_v42 = vand.u32 65535, %v543_v36  ;;  %p1214_p7 = pneg %p1213_p5 }
 0x129   : > { %v547_v38 = vcvt.s32.f32 %v545_v37  ;;  %v546_v45 = vcvt.s32.f32 %v544_v42 }
 0x12b   : > { %548 = vmin.xlane.f32.xlu1 %v547_v38 }
 0x1b4   : > { %v534_v40 = vpop.xlane.xlu1 %533 }
 0x1b5   : > { %vm535_vm3 = vcmp.eq.f32.partialorder %v532_v35, %v534_v40  ;;  %v540_v8 = vcvt.f32.s32 %v534_v40 }
 0x1b6   : > { %v536_v43 = vsel %vm535_vm3, %v531_v41, inf }
 0x1b7   : > { %537 = vmin.xlane.f32.xlu0 %v536_v43  ;;  %v541_v13 = vshll.u32 %v540_v8, 16 }
 0x1b8   : > { %v549_v44 = vpop.xlane.xlu1 %548 }
 0x1b9   : > { %vm550_vm4 = vcmp.eq.f32.partialorder %v547_v38, %v549_v44  ;;  %v555_v14 = vcvt.f32.s32 %v549_v44 }
 0x1ba   : > { %v551_v46 = vsel %vm550_vm4, %v546_v45, inf }
 0x1bb   : > { %552 = vmin.xlane.f32.xlu1 %v551_v46  ;;  %v556_v21 = vshll.u32 %v555_v14, 16 }
 0x1cc   : > { %566 = vrot.lane.b32.xlu1 %v1624_v56, %s1403_s5 }
 0x1cd   : > { %564 = vrot.lane.b32.xlu0 %v1626_v58, %s1403_s5 }
 0x244   : > { %v538_v10 = vpop.xlane.xlu0 %537 }
 0x245   : > { %v539_v15 = vcvt.f32.s32 %v538_v10 }
 0x247   : > { %v1640_v16 = vadd.s32 %v541_v13, %v539_v15 }
 0x248   : > { %v553_v18 = vpop.xlane.xlu1 %552  ;;  %v565_v19 = vpop.permute.xlu0 %564 }
 0x249   : > { %v554_v22 = vcvt.f32.s32 %v553_v18  ;;  %vm560_vm10 = vcmp.eq.s32.totalorder %v1640_v16, 1  ;;  %vm693_vm11 = vcmp.eq.s32.totalorder %v1614_v28, %v1640_v16  ;;  %vm572_vm2 = vcmp.eq.s32.totalorder %v1640_v16, 2 }
 0x24a   : > { %v570_v24 = vsel %vm560_vm10, %v1626_v58, %v565_v19  ;;  %vm1656_vm12 = vmand %vm627_vm9, %vm693_vm11  ;;  %vm596_vm5 = vcmp.eq.s32.totalorder %v1640_v16, 4  ;;  %vm608_vm7 = vcmp.eq.s32.totalorder %v1640_v16, 5 }
 0x24b   : > { %v1651_v26 = vadd.s32 %v556_v21, %v554_v22  ;;  %576 = vrot.lane.b32.xlu1 %v570_v24, %s1403_s5  ;;  %v741_v31 = vsel %vm1656_vm12, %v739_v3, 0.0  ;;  %v701_v33 = vsel %vm1656_vm12, %v699_v25, 0.0  ;;  %vm680_vm12 = vcmask 130048  }
 0x24c   : > { %v567_v29 = vpop.permute.xlu1 %566  ;;  %v703_v36 = vsel %vm515_vm0, %v701_v33, 0.0  ;;  %v743_v38 = vsel %vm515_vm0, %v741_v31, 0.0 }
 0x24d   : > { %vm561_vm14 = vcmp.eq.s32.totalorder %v1651_v26, 1  ;;  %vm694_vm15 = vcmp.eq.s32.totalorder %v1614_v28, %v1651_v26  ;;  %vm573_vm3 = vcmp.eq.s32.totalorder %v1651_v26, 2  ;;  %vm585_vm4 = vcmp.eq.s32.totalorder %v1651_v26, 3 }
 0x24e   : > { %v571_v32 = vsel %vm561_vm14, %v1624_v56, %v567_v29  ;;  %vm696_vm1 = vmand %vm628_vm13, %vm694_vm15  ;;  %vm597_vm6 = vcmp.eq.s32.totalorder %v1651_v26, 4  ;;  %vm609_vm8 = vcmp.eq.s32.totalorder %v1651_v26, 5  ;;  %vm758_vm14 = vcmp.eq.s32.totalorder %v1614_v28, 1 }
 0x24f   : > { %578 = vrot.lane.b32.xlu1 %v571_v32, %s1403_s5  ;;  %v702_v34 = vsel %vm696_vm1, %v700_v30, 0.0  ;;  %v742_v35 = vsel %vm696_vm1, %v740_v6, 0.0  ;;  %vm756_vm15 = vcmp.eq.s32.totalorder %v1614_v28, 0 }
 0x250   : > { %v704_v37 = vsel %vm515_vm0, %v702_v34, 0.0  ;;  %v744_v39 = vsel %vm515_vm0, %v742_v35, 0.0  ;;  %vm584_vm0 = vcmp.eq.s32.totalorder %v1640_v16, 3 }
 0x251   : > { %v1676_v40 = vadd.f32 %v704_v37, %v703_v36  ;;  %v1678_v41 = vadd.f32 %v744_v39, %v743_v38 }
 0x2bd   : > { %v577_v42 = vpop.permute.xlu1 %576 }
 0x2be   : > { %v582_v43 = vsel %vm572_vm2, %v1626_v58, %v577_v42 }
 0x2bf   : > { %588 = vrot.lane.b32.xlu0 %v582_v43, %s1403_s5 }
 0x2c1   : > { %v579_v44 = vpop.permute.xlu1 %578 }
 0x2c2   : > { %v583_v45 = vsel %vm573_vm3, %v1624_v56, %v579_v44 }
 0x2c3   : > { %590 = vrot.lane.b32.xlu1 %v583_v45, %s1403_s5 }
 0x331   : > { %v589_v46 = vpop.permute.xlu0 %588 }
 0x332   : > { %v594_v47 = vsel %vm584_vm0, %v1626_v58, %v589_v46 }
 0x333   : > { %600 = vrot.lane.b32.xlu0 %v594_v47, %s1403_s5 }
 0x335   : > { %v591_v48 = vpop.permute.xlu1 %590 }
 0x336   : > { %v595_v49 = vsel %vm585_vm4, %v1624_v56, %v591_v48 }
 0x337   : > { %602 = vrot.lane.b32.xlu1 %v595_v49, %s1403_s5 }
 0x3a5   : > { %v601_v50 = vpop.permute.xlu0 %600 }
 0x3a6   : > { %v606_v51 = vsel %vm596_vm5, %v1626_v58, %v601_v50 }
 0x3a7   : > { %612 = vrot.lane.b32.xlu0 %v606_v51, %s1403_s5 }
 0x3a9   : > { %v603_v53 = vpop.permute.xlu1 %602 }
 0x3aa   : > { %v607_v54 = vsel %vm597_vm6, %v1624_v56, %v603_v53 }
 0x3ab   : > { %614 = vrot.lane.b32.xlu1 %v607_v54, %s1403_s5  ;;  %636 = vrot.lane.b32.xlu0 %v629_v52, %s1404_s17  ;;  %s1406_s5 = smov [#allocation4]  }
 0x3ac   : > { %s1215_s7 = sshll.u32 %s1406_s5, 4  ;;  %s1216_s7 = int_to_ptr.vmem [resolvable:$false] %s1215_s7 }
 0x3ad   : > { %s1217_s8 = scalar_lea.vmem %s1216_s7, 256  ;;  %p1218_p9 = scmp.lt.s32.totalorder %s1720_s30, %s1216_s7 }
 0x3ae   : > { %p1219_p10 = scmp.lt.s32.totalorder %s1217_s8, %s1211_s28 }
 0x3af   : > { %638 = vrot.lane.b32.xlu1 %v630_v55, %s1404_s17  ;;  %658 = vrot.lane.b32.xlu0 %v1015_v57, %s1404_s17 }
 0x3b0   : > { %p1220_p11 = por %p1219_p10, %p1218_p9 }
 0x3b2   : > { %p1221_p12 = pnand %p1220_p11, %p1214_p7 }
 0x3b3   : > { %660 = vrot.lane.b32.xlu1 %v1016_v59, %s1404_s17 }
 0x419   : > { %v613_v60 = vpop.permute.xlu0 %612 }
 0x41a   : > { %v618_v62 = vsel %vm608_vm7, %v1626_v58, %v613_v60 }
 0x41d   : > { %v615_v61 = vpop.permute.xlu1 %614  ;;  %v637_v63 = vpop.permute.xlu0 %636 }
 0x41e   : > { %v642_v0 = vsub.f32 %v618_v62, %v637_v63  ;;  %v619_v2 = vsel %vm609_vm8, %v1624_v56, %v615_v61 }
 0x420   : > { %v644_v1 = vand.u32 2147483647, %v642_v0 }
 0x421   : > { %v639_v3 = vpop.permute.xlu1 %638  ;;  %v659_v10 = vpop.permute.xlu0 %658 }
 0x422   : > { %v643_v4 = vsub.f32 %v619_v2, %v639_v3  ;;  %v648_v5 = vmul.f32 0.5, %v644_v1  ;;  %v1017_v9 = vadd.f32 -0.5, %v644_v1  ;;  %vm646_vm10 = vcmp.lt.f32.partialorder %v644_v1, 1.0 }
 0x424   : > { %v645_v6 = vand.u32 2147483647, %v643_v4  ;;  %v650_v8 = vmul.f32 %v648_v5, %v644_v1 }
 0x425   : > { %v661_v16 = vpop.permute.xlu1 %660 }
 0x426   : > { %v654_v12 = vsel %vm646_vm10, %v650_v8, %v1017_v9  ;;  %v649_v13 = vmul.f32 0.5, %v645_v6  ;;  %v1018_v58 = vadd.f32 -0.5, %v645_v6  ;;  %vm647_vm11 = vcmp.lt.f32.partialorder %v645_v6, 1.0 }
 0x427   : > { %v664_v14 = vmul.f32 %v659_v10, %v654_v12 }
 0x428   : > { %v651_v15 = vmul.f32 %v649_v13, %v645_v6 }
 0x429   : > { %v670_v17 = vsel %vm627_vm9, %v664_v14, 0.0  ;;  %vm755_vm9 = vcmp.eq.s32.totalorder %v1634_v7, 0 }
 0x42a   : > { %v655_v18 = vsel %vm647_vm11, %v651_v15, %v1018_v58  ;;  %674 = vrot.lane.b32.xlu0 %v670_v17, %s1405_s19  ;;  %vm759_vm2 = vmand %vm755_vm9, %vm758_vm14 }
 0x42b   : > { %v665_v56 = vmul.f32 %v661_v16, %v655_v18  ;;  %vm757_vm3 = vmand %vm755_vm9, %vm756_vm15 }
 0x42d   : > { %v671_v19 = vsel %vm628_vm13, %v665_v56, 0.0  ;;  %vm760_vm13 = vcmp.eq.s32.totalorder %v1614_v28, 2 }
 0x42e   : > { %676 = vrot.lane.b32.xlu1 %v671_v19, %s1405_s19  ;;  %vm761_vm1 = vmand %vm755_vm9, %vm760_vm13 }
 0x452   : > { %706 = vadd.xlane.f32.xlu1 %v1676_v40 }
 0x49c   : > { %v675_v21 = vpop.permute.xlu0 %674 }
 0x49d   : > { %v681_v23 = vsel %vm680_vm12, %v675_v21, 0.0 }
 0x4a0   : > { %v677_v22 = vpop.permute.xlu1 %676 }
 0x4a1   : > { %v682_v24 = vsel %vm680_vm12, %v677_v22, 0.0 }
 0x4a2   : > { %v683_v25 = vadd.f32 %v682_v24, %v681_v23 }
 0x4a4   : > { %684 = vadd.xlane.f32.xlu0 %v683_v25 }
 0x4a8   : > { %746 = vadd.xlane.f32.xlu0 %v1678_v41 }
 0x4df   : > { %v707_v11 = vpop.xlane.xlu1 %706 }
 0x4e0   : > { %v708_v26 = vrot.slane %v707_v11, 4 }
 0x4e2   : > { %v709_v27 = vadd.f32 %v708_v26, %v707_v11 }
 0x4e4   : > { %v710_v29 = vrot.slane %v709_v27, 2 }
 0x4e6   : > { %v711_v32 = vadd.f32 %v710_v29, %v709_v27 }
 0x4e8   : > { %v712_v38 = vrot.slane %v711_v32, 1 }
 0x4ea   : > { %v713_v43 = vadd.f32 %v712_v38, %v711_v32 }
 0x531   : > { %v685_v30 = vpop.xlane.xlu0 %684 }
 0x532   : > { %v686_v31 = vrot.slane %v685_v30, 4 }
 0x534   : > { %v687_v20 = vadd.f32 %v686_v31, %v685_v30 }
 0x535   : > { %v747_v33 = vpop.xlane.xlu0 %746 }
 0x536   : > { %v688_v34 = vrot.slane %v687_v20, 2  ;;  %v748_v35 = vrot.slane %v747_v33, 4 }
 0x538   : > { %v749_v36 = vadd.f32 %v748_v35, %v747_v33  ;;  %v689_v37 = vadd.f32 %v688_v34, %v687_v20 }
 0x53a   : > { %v750_v39 = vrot.slane %v749_v36, 2  ;;  %v690_v40 = vrot.slane %v689_v37, 1 }
 0x53c   : > { %v751_v42 = vadd.f32 %v750_v39, %v749_v36  ;;  %v691_v41 = vadd.f32 %v690_v40, %v689_v37 }
 0x53e   : > { %1035 = vpush %v691_v41  ;;  %v752_v44 = vrot.slane %v751_v42, 1 }
 0x53f   : > { %1037 = vpush %v713_v43 }
 0x540   : > { %v753_v45 = vadd.f32 %v752_v44, %v751_v42 }
 0x542   : > { %1039 = vpush %v753_v45 }
 0x56f   : > { %s1036_s25 = spop %1035 }
 0x570   : > { %s1038_s10 = spop %1037  ;;  %v766_v48 = vstv %s1036_s25 }
 0x571   : > { %v764_v47 = vstv %s1038_s10 }
 0x573   : > { %s1040_s27 = spop %1039 }
 0x574   : > { %v762_v46 = vstv %s1040_s27 }
 0x575   : > { %v763_v7 = vsel %vm761_vm1, %v762_v46, 0.0 }
 0x576   : > { %v765_v49 = vsel %vm759_vm2, %v764_v47, %v763_v7 }
 0x577   : > { %v767_v28 = vsel %vm757_vm3, %v766_v48, %v765_v49 }
 0x578   : > { %768 = vst [vmem:[%s478_s29] sm:$0xff] %v767_v28 }
 0x579   : > { %1224 = shalt.err (!%p1221_p12)
}
 0x57a   : > { %s1225_s22 = scalar_lea.hbm %s1718_s11, 128  ;;  %s1229_s19 = scalar_lea.hbm %s1764_s3, 384 }
 0x57b   : > { %p1226_p13 = scmp.ne.s32.totalorder %s1718_s11, %s1225_s22  ;;  %p1230_p2 = scmp.lt.u32.totalorder %s1718_s11, %s1764_s3 }
 0x57c   : > { %p1231_p3 = scmp.lt.u32.totalorder %s1229_s19, %s1225_s22  ;;  %p1233_p5 = scmp.lt.u32.totalorder %s1225_s22, %s1718_s11 }
 0x57d   : > { %p1227_p0 = pnand %p1226_p13, %p1470_p6 }
 0x57e   : > { %p1232_p4 = por %p1231_p3, %p1230_p2 }
 0x57f   : > { %p1228_p1 = pneg %p1227_p0 }
 0x580   : > { %p1234_p7 = por %p1233_p5, %p1232_p4 }
 0x582   : > { %p1235_p9 = pnand %p1234_p7, %p1228_p1 }
 0x584   : > { %1238 = shalt.err (!%p1235_p9)
}
 0x585   : > { %1041 = dma.vmem_to_hbm [thread:$0]  (%p1470_p6), %s1720_s30, 128, %s1718_s11, %s770_s16  }
 0x586 PF: > { %p1047_p10 = scmp.ge.s32.totalorder %s1337_s15, 2  ;;  %s795_s10 = sand.u32 1, %s1325_s12  }
 0x587   : > { %s796_s26 = scalar_lea.sflag [#allocation5], %s795_s10 }
 0x588   : > { %p1044_p11 = pnand %p1047_p10, %p1474_p8 }
 0x58a   : > { %1320 = dma.done.wait (!%p1044_p11), %s796_s26, 128  }
 0x58b   : > { %1322 = vsyncadd (!%p1044_p11), %s796_s26, 4294967168  ;;  %p13_p12 = scmp.ge.s32.totalorder %s1452_s18, 5   ;;  %s1777_s12 = smov %s1329_s13 }
 0x58c   : > { %s1778_s13 = smov %s1333_s14  ;;  %s1779_s14 = smov %s1464_s21 }
 0x58d   : > { %s1780_s15 = smov %s1452_s18  ;;  %15 = sbr.rel (!%p13_p12) target bundleno = 3 (0x3), region = 250 }
 0x594   :  { %801 = vsyncpa [#allocation5], 1 }
 0x595   :  { %803 = vsyncpa [#allocation5 + $0x1], 1 }

</bundles_post_ra>
